<compile_context>
chip_gen: v7x
topology: tpu7x:2x2x1
jax: 0.10.0
libtpu: 0.0.40
codegen_flags: <defaults>
</compile_context>

<pallas_src>
import functools

import jax
import jax.numpy as jnp
from jax.experimental import pallas as pl
from jax.experimental.pallas import tpu as pltpu


_VMEM_LIMIT = 32 * 1024 * 1024   # actual working set; safe on v5e/v6e/v7x


def _round_up(x, m):
    return ((x + m - 1) // m) * m


def make_grid_points(dim, gz):
    """Flattened regular grid (G, DIM), G = gz**dim (same ordering as torch)."""
    t = jnp.linspace(-(gz / 2.0), gz / 2.0, gz, dtype=jnp.float32)
    coords = jnp.meshgrid(*([t] * dim), indexing="ij")
    return jnp.stack(coords, axis=-1).reshape(gz ** dim, dim)


# ===================== distance + fused-attrs producer ===================== #
def _disty_attrs_kernel(points_ref, attrs_ref, grid_exp_ref, sel_ref, out_ref,
                        *, ndim, n_attr):
    """out[i, col] = sel0[col]*||p_i - grid[col//C]|| + sum_a sel_{a+1}[col]*attr[i,a]."""
    d0 = points_ref[:, 0:1] - grid_exp_ref[0:1, :]
    acc = d0 * d0                                  # init with first diff (no zeros pass)
    for d in range(1, ndim):
        dd = points_ref[:, d:d + 1] - grid_exp_ref[d:d + 1, :]
        acc = acc + dd * dd
    val = jnp.sqrt(acc) * sel_ref[0:1, :]          # distance on channel-0 columns
    for a in range(n_attr):
        val = val + attrs_ref[:, a:a + 1] * sel_ref[a + 1:a + 2, :]
    out_ref[...] = val


def _disty_noattrs_kernel(points_ref, grid_exp_ref, out_ref, *, ndim):
    """C == 1: every column is a distance column; no attrs DMA, no selector."""
    d0 = points_ref[:, 0:1] - grid_exp_ref[0:1, :]
    acc = d0 * d0
    for d in range(1, ndim):
        dd = points_ref[:, d:d + 1] - grid_exp_ref[d:d + 1, :]
        acc = acc + dd * dd
    out_ref[...] = jnp.sqrt(acc)


def disty_forward(inputs, dim, gz, *, tn=1024, lane_block=2048, single_block_max=512):
    """Produces distances_with_attrs (N*G, 1+A) — the input of Agg.forward."""
    assert gz % 2 == 1, "Grid size must be odd!"
    points = jnp.concatenate([inp["points"] for inp in inputs], 0).astype(jnp.float32)
    n = points.shape[0]
    g_total = gz ** dim

    has_attrs = "attrs" in inputs[0]
    if has_attrs:
        attrs = jnp.concatenate([inp["attrs"] for inp in inputs], 0).astype(jnp.float32)
        n_attr = attrs.shape[-1]
    else:
        attrs, n_attr = None, 0
    c = 1 + n_attr
    gc = g_total * c

    # Lane blocking: exact-width single block only when tiny; otherwise
    # 128-aligned lane-dense blocks (unmasked vst) + wrapper-side slice.
    if gc < single_block_max:
        cblk, gc_pad = gc, gc
    else:
        gc_pad = _round_up(gc, 128)
        cblk = min(lane_block, gc_pad)

    gp = make_grid_points(dim, gz)                              # (G, dim)
    grid_exp = jnp.repeat(gp, c, axis=0).T                      # (dim, G*C)
    grid_exp = jnp.pad(grid_exp, ((0, 0), (0, gc_pad - gc)))

    tn_eff = min(tn, _round_up(n, 8))
    grid = (pl.cdiv(n, tn_eff), pl.cdiv(gc_pad, cblk))

    if has_attrs:
        ch = jnp.tile(jnp.arange(c, dtype=jnp.int32), g_total)   # channel id per column
        ch = jnp.pad(ch, (0, gc_pad - gc), constant_values=-1)   # padded cols -> no channel
        sel = (ch[None, :] == jnp.arange(c, dtype=jnp.int32)[:, None]).astype(jnp.float32)
        kernel = functools.partial(_disty_attrs_kernel, ndim=dim, n_attr=n_attr)
        in_specs = [
            pl.BlockSpec((tn_eff, dim), lambda i, j: (i, 0)),
            pl.BlockSpec((tn_eff, n_attr), lambda i, j: (i, 0)),
            pl.BlockSpec((dim, cblk), lambda i, j: (0, j)),
            pl.BlockSpec((c, cblk), lambda i, j: (0, j)),
        ]
        args = (points, attrs, grid_exp, sel)
    else:
        kernel = functools.partial(_disty_noattrs_kernel, ndim=dim)
        in_specs = [
            pl.BlockSpec((tn_eff, dim), lambda i, j: (i, 0)),
            pl.BlockSpec((dim, cblk), lambda i, j: (0, j)),
        ]
        args = (points, grid_exp)

    out = pl.pallas_call(
        kernel,
        out_shape=jax.ShapeDtypeStruct((n, gc_pad), jnp.float32),
        grid_spec=pltpu.PrefetchScalarGridSpec(
            num_scalar_prefetch=0,
            grid=grid,
            in_specs=in_specs,
            out_specs=pl.BlockSpec((tn_eff, cblk), lambda i, j: (i, j)),
        ),
        compiler_params=pltpu.CompilerParams(
            dimension_semantics=("parallel", "parallel"),
            vmem_limit_bytes=_VMEM_LIMIT),
    )(*args)

    if gc_pad != gc:
        out = out[:, :gc]
    return out.reshape(n * g_total, c)              # free view when gc_pad == gc


# ============================ Agg (the spec) =============================== #
def _agg_kernel(seg_ref, hs_ref, out_ref, *, n_total, ragged):
    """out (B,GCB) += seg (B,NT) @ hs (NT,GCB) — one MXU contraction per tile.

    out_ref is the resident accumulator across the point-reduction grid axis.
    Ragged-tail masking is traced only when N % NT != 0 and executed only on
    the last reduction step; the hs operand is the one masked (seg padding is
    real zeros in HBM), so no garbage can reach the accumulator.
    """
    k = pl.program_id(1)

    @pl.when(k == 0)
    def _init():
        out_ref[...] = jnp.zeros_like(out_ref)

    def _acc(hs):
        out_ref[...] += jnp.dot(seg_ref[...], hs,
                                preferred_element_type=jnp.float32)

    if not ragged:
        _acc(hs_ref[...])
    else:
        is_last = k == pl.num_programs(1) - 1

        @pl.when(jnp.logical_not(is_last))
        def _body():
            _acc(hs_ref[...])

        @pl.when(is_last)
        def _tail():
            nt = hs_ref.shape[0]
            valid = (jax.lax.broadcasted_iota(jnp.int32, (nt, 1), 0) + k * nt) < n_total
            _acc(jnp.where(valid, hs_ref[...], 0.0))


def _segment_selector(counts, b, n, n_pad):
    """(B, N_pad) one-hot point->input selector, zero-padded on the point axis."""
    bid = jnp.concatenate(
        [jnp.full((cnt,), i, jnp.int32) for i, cnt in enumerate(counts)])
    seg = (jnp.arange(b, dtype=jnp.int32)[:, None] == bid[None, :]).astype(jnp.float32)
    return jnp.pad(seg, ((0, 0), (0, n_pad - n)))


def _lane_block(gc, lane_block):
    """>= 2 lane blocks when G*C is large enough (v7x megacore); 128-aligned."""
    if gc < 256:
        return gc
    return min(lane_block, _round_up(pl.cdiv(gc, 2), 128))


def agg_forward(distances_with_attrs, inputs, dim, gz, *, ntile=1024, lane_block=2048):
    """Mirrors Agg.forward(distances_with_attrs, inputs) -> (B, C, gz, ..., gz)."""
    g_total = gz ** dim
    dwa = distances_with_attrs.astype(jnp.float32)
    c = dwa.shape[-1]
    n = dwa.shape[0] // g_total
    b = len(inputs)
    counts = [int(inp["points"].shape[0]) for inp in inputs]
    assert sum(counts) == n

    gc = g_total * c
    hs = dwa.reshape(n, gc)                          # free view of (N, G, C)

    nt = _round_up(n, 8) if n <= ntile else ntile    # point tile (reduction axis, last)
    n_pad = _round_up(n, nt)
    ragged = (n % nt) != 0
    seg = _segment_selector(counts, b, n, n_pad)     # (B, N_pad), lane-dense, zero padded

    gcb = _lane_block(gc, lane_block)
    grid = (pl.cdiv(gc, gcb), pl.cdiv(n, nt))        # reduction (points) axis last

    summed = pl.pallas_call(
        functools.partial(_agg_kernel, n_total=n, ragged=ragged),
        out_shape=jax.ShapeDtypeStruct((b, gc), jnp.float32),
        grid_spec=pltpu.PrefetchScalarGridSpec(
            num_scalar_prefetch=0,
            grid=grid,
            in_specs=[
                pl.BlockSpec((b, nt), lambda j, k: (0, k)),
                pl.BlockSpec((nt, gcb), lambda j, k: (k, j)),
            ],
            out_specs=pl.BlockSpec((b, gcb), lambda j, k: (0, j)),
        ),
        compiler_params=pltpu.CompilerParams(
            dimension_semantics=("parallel", "arbitrary"),
            vmem_limit_bytes=_VMEM_LIMIT),
    )(seg, hs)

    # TODO(synk): `agg` is an external nn.Module in the spec; we implement the
    # permutation-invariant SUM over each input's points, channel-major so that
    # .view((1, -1) + (gz,)*dim) yields per-channel grid maps.
    return summed.reshape(b, g_total, c).transpose(0, 2, 1).reshape((b, c) + (gz,) * dim)


# =================== fused producer + Agg (no HBM intermediate) ============ #
def _fused_attrs_kernel(points_ref, attrs_ref, grid_exp_ref, sel_ref, seg_ref, out_ref,
                        *, ndim, n_attr, n_total, ragged):
    k = pl.program_id(1)

    @pl.when(k == 0)
    def _init():
        out_ref[...] = jnp.zeros_like(out_ref)

    d0 = points_ref[:, 0:1] - grid_exp_ref[0:1, :]
    acc = d0 * d0
    for d in range(1, ndim):
        dd = points_ref[:, d:d + 1] - grid_exp_ref[d:d + 1, :]
        acc = acc + dd * dd
    val = jnp.sqrt(acc) * sel_ref[0:1, :]
    for a in range(n_attr):
        val = val + attrs_ref[:, a:a + 1] * sel_ref[a + 1:a + 2, :]

    def _acc(hs):
        out_ref[...] += jnp.dot(seg_ref[...], hs,
                                preferred_element_type=jnp.float32)

    if not ragged:
        _acc(val)
    else:
        is_last = k == pl.num_programs(1) - 1

        @pl.when(jnp.logical_not(is_last))
        def _body():
            _acc(val)

        @pl.when(is_last)
        def _tail():
            nt = val.shape[0]
            valid = (jax.lax.broadcasted_iota(jnp.int32, (nt, 1), 0) + k * nt) < n_total
            _acc(jnp.where(valid, val, 0.0))


def _fused_noattrs_kernel(points_ref, grid_exp_ref, seg_ref, out_ref,
                          *, ndim, n_total, ragged):
    k = pl.program_id(1)

    @pl.when(k == 0)
    def _init():
        out_ref[...] = jnp.zeros_like(out_ref)

    d0 = points_ref[:, 0:1] - grid_exp_ref[0:1, :]
    acc = d0 * d0
    for d in range(1, ndim):
        dd = points_ref[:, d:d + 1] - grid_exp_ref[d:d + 1, :]
        acc = acc + dd * dd
    val = jnp.sqrt(acc)

    def _acc(hs):
        out_ref[...] += jnp.dot(seg_ref[...], hs,
                                preferred_element_type=jnp.float32)

    if not ragged:
        _acc(val)
    else:
        is_last = k == pl.num_programs(1) - 1

        @pl.when(jnp.logical_not(is_last))
        def _body():
            _acc(val)

        @pl.when(is_last)
        def _tail():
            nt = val.shape[0]
            valid = (jax.lax.broadcasted_iota(jnp.int32, (nt, 1), 0) + k * nt) < n_total
            _acc(jnp.where(valid, val, 0.0))


def fused_agg_forward(inputs, dim, gz, *, tn=512, lane_block=1024):
    """disty + Agg fused: the (N*G, C) stream never round-trips through HBM."""
    assert gz % 2 == 1, "Grid size must be odd!"
    points = jnp.concatenate([inp["points"] for inp in inputs], 0).astype(jnp.float32)
    n = points.shape[0]
    b = len(inputs)
    counts = [int(inp["points"].shape[0]) for inp in inputs]
    g_total = gz ** dim

    has_attrs = "attrs" in inputs[0]
    if has_attrs:
        attrs = jnp.concatenate([inp["attrs"] for inp in inputs], 0).astype(jnp.float32)
        n_attr = attrs.shape[-1]
    else:
        attrs, n_attr = None, 0
    c = 1 + n_attr
    gc = g_total * c

    gp = make_grid_points(dim, gz)
    grid_exp = jnp.repeat(gp, c, axis=0).T                      # (dim, G*C)

    tn_eff = _round_up(n, 8) if n <= tn else tn
    n_pad = _round_up(n, tn_eff)
    ragged = (n % tn_eff) != 0
    seg = _segment_selector(counts, b, n, n_pad)

    cblk = _lane_block(gc, lane_block)
    grid = (pl.cdiv(gc, cblk), pl.cdiv(n, tn_eff))              # point reduction last

    if has_attrs:
        ch = jnp.tile(jnp.arange(c, dtype=jnp.int32), g_total)
        sel = (ch[None, :] == jnp.arange(c, dtype=jnp.int32)[:, None]).astype(jnp.float32)
        kernel = functools.partial(_fused_attrs_kernel, ndim=dim, n_attr=n_attr,
                                   n_total=n, ragged=ragged)
        in_specs = [
            pl.BlockSpec((tn_eff, dim), lambda j, k: (k, 0)),
            pl.BlockSpec((tn_eff, n_attr), lambda j, k: (k, 0)),
            pl.BlockSpec((dim, cblk), lambda j, k: (0, j)),
            pl.BlockSpec((c, cblk), lambda j, k: (0, j)),
            pl.BlockSpec((b, tn_eff), lambda j, k: (0, k)),
        ]
        args = (points, attrs, grid_exp, sel, seg)
    else:
        kernel = functools.partial(_fused_noattrs_kernel, ndim=dim,
                                   n_total=n, ragged=ragged)
        in_specs = [
            pl.BlockSpec((tn_eff, dim), lambda j, k: (k, 0)),
            pl.BlockSpec((dim, cblk), lambda j, k: (0, j)),
            pl.BlockSpec((b, tn_eff), lambda j, k: (0, k)),
        ]
        args = (points, grid_exp, seg)

    summed = pl.pallas_call(
        kernel,
        out_shape=jax.ShapeDtypeStruct((b, gc), jnp.float32),
        grid_spec=pltpu.PrefetchScalarGridSpec(
            num_scalar_prefetch=0,
            grid=grid,
            in_specs=in_specs,
            out_specs=pl.BlockSpec((b, cblk), lambda j, k: (0, j)),
        ),
        compiler_params=pltpu.CompilerParams(
            dimension_semantics=("parallel", "arbitrary"),
            vmem_limit_bytes=_VMEM_LIMIT),
    )(*args)

    return summed.reshape(b, g_total, c).transpose(0, 2, 1).reshape((b, c) + (gz,) * dim)


# ============================== references ================================= #
def disty_reference(inputs, dim, gz):
    points = jnp.concatenate([inp["points"] for inp in inputs], 0).astype(jnp.float32)
    n = points.shape[0]
    g_total = gz ** dim
    grid = make_grid_points(dim, gz)
    diff = points[:, None, :] - grid[None, :, :]
    d = jnp.sqrt(jnp.sum(diff * diff, axis=-1)).reshape(n * g_total, 1)
    if "attrs" in inputs[0]:
        attrs = jnp.concatenate([inp["attrs"] for inp in inputs], 0).astype(jnp.float32)
        a = attrs.shape[-1]
        rep = jnp.broadcast_to(attrs[:, None, :], (n, g_total, a)).reshape(n * g_total, a)
        return jnp.concatenate([d, rep], axis=1)
    return d


def agg_reference(distances_with_attrs, inputs, dim, gz):
    g_total = gz ** dim
    c = distances_with_attrs.shape[-1]
    n = distances_with_attrs.shape[0] // g_total
    all_hs = distances_with_attrs.reshape(n, g_total, c)
    outs, idx = [], 0
    for inp in inputs:
        m = inp["points"].shape[0]
        s = jnp.sum(all_hs[idx:idx + m], axis=0)                 # (G, C)  assumed agg
        outs.append(jnp.transpose(s).reshape((1, c) + (gz,) * dim))
        idx += m
    return jnp.concatenate(outs, axis=0)


# ================================== main =================================== #
if __name__ == "__main__":
    key = jax.random.PRNGKey(0)

    def make_inputs(k, dim, counts, n_attr):
        keys = jax.random.split(k, 2 * len(counts))
        out = []
        for i, cnt in enumerate(counts):
            d = {"points": jax.random.normal(keys[2 * i], (cnt, dim), jnp.float32) * 2.0}
            if n_attr > 0:
                d["attrs"] = jax.random.normal(keys[2 * i + 1], (cnt, n_attr), jnp.float32)
            out.append(d)
        return out

    cases = [
        # (dim, gz, per-input point counts, n_attrs, disty row tile, agg point tile)
        (2, 5, (4, 4), 3, 1024, 1024),      # original small demo shape
        (2, 5, (150, 111), 3, 128, 128),    # ragged rows + multi-step MXU reduction
        (3, 5, (9, 11), 0, 1024, 1024),     # dim=3, no-attrs kernel variants
        (2, 9, (40, 30), 3, 1024, 1024),    # G*C >= 256: >=2 lane blocks (ragged lane tail)
    ]
    for dim, gz, counts, n_attr, tn, ntile in cases:
        key, sub = jax.random.split(key)
        inputs = make_inputs(sub, dim, counts, n_attr)

        dwa = jax.block_until_ready(disty_forward(inputs, dim, gz, tn=tn))
        dwa_ref = disty_reference(inputs, dim, gz)
        assert dwa.shape == dwa_ref.shape, (dwa.shape, dwa_ref.shape)
        assert jnp.allclose(dwa, dwa_ref, atol=1e-3, rtol=1e-4), "disty mismatch"

        out = jax.block_until_ready(agg_forward(dwa, inputs, dim, gz, ntile=ntile))
        out_ref = agg_reference(dwa_ref, inputs, dim, gz)
        c = 1 + n_attr
        assert out.shape == (len(inputs), c) + (gz,) * dim, out.shape
        assert jnp.allclose(out, out_ref, atol=1e-3, rtol=1e-4), "agg mismatch"

        fused = jax.block_until_ready(fused_agg_forward(inputs, dim, gz, tn=min(tn, 512)))
        assert fused.shape == out_ref.shape, fused.shape
        assert jnp.allclose(fused, out_ref, atol=1e-3, rtol=1e-4), "fused mismatch"

    print("KERNEL_OK")
</pallas_src>

<mosaic_0001>
module attributes {stable_mosaic.version = 11 : i64} {
  func.func @_disty_attrs_kernel(%arg0: i32, %arg1: i32, %arg2: memref<8x2xf32, #tpu.memory_space<vmem>>, %arg3: memref<8x3xf32, #tpu.memory_space<vmem>>, %arg4: memref<2x100xf32, #tpu.memory_space<vmem>>, %arg5: memref<4x100xf32, #tpu.memory_space<vmem>>, %arg6: memref<8x100xf32, #tpu.memory_space<vmem>>) attributes {dimension_semantics = [#tpu.dimension_semantics<parallel>, #tpu.dimension_semantics<parallel>], iteration_bounds = array<i64: 1, 1>, scalar_prefetch = 0 : i64, scratch_operands = 0 : i64, tpu.core_type = #tpu.core_type<tc>, window_params = [{transform_indices = @transform_0, window_bounds = array<i64: 8, 2>}, {transform_indices = @transform_1, window_bounds = array<i64: 8, 3>}, {transform_indices = @transform_2, window_bounds = array<i64: 2, 100>}, {transform_indices = @transform_3, window_bounds = array<i64: 4, 100>}, {transform_indices = @transform_4, window_bounds = array<i64: 8, 100>}]} {
    %c0 = arith.constant 0 : index
    %c0_0 = arith.constant 0 : index
    %0 = vector.load %arg2[%c0, %c0_0] : memref<8x2xf32, #tpu.memory_space<vmem>>, vector<8x1xf32>
    %c0_1 = arith.constant 0 : index
    %c0_2 = arith.constant 0 : index
    %1 = vector.load %arg4[%c0_1, %c0_2] : memref<2x100xf32, #tpu.memory_space<vmem>>, vector<1x100xf32>
    %2 = vector.broadcast %0 : vector<8x1xf32> to vector<8x100xf32>
    %3 = vector.broadcast %1 : vector<1x100xf32> to vector<8x100xf32>
    %4 = arith.subf %2, %3 : vector<8x100xf32>
    %5 = arith.mulf %4, %4 : vector<8x100xf32>
    %c0_3 = arith.constant 0 : index
    %c1 = arith.constant 1 : index
    %6 = vector.load %arg2[%c0_3, %c1] : memref<8x2xf32, #tpu.memory_space<vmem>>, vector<8x1xf32>
    %c1_4 = arith.constant 1 : index
    %c0_5 = arith.constant 0 : index
    %7 = vector.load %arg4[%c1_4, %c0_5] : memref<2x100xf32, #tpu.memory_space<vmem>>, vector<1x100xf32>
    %8 = vector.broadcast %6 : vector<8x1xf32> to vector<8x100xf32>
    %9 = vector.broadcast %7 : vector<1x100xf32> to vector<8x100xf32>
    %10 = arith.subf %8, %9 : vector<8x100xf32>
    %11 = arith.mulf %10, %10 : vector<8x100xf32>
    %12 = arith.addf %5, %11 : vector<8x100xf32>
    %13 = math.sqrt %12 : vector<8x100xf32>
    %c0_6 = arith.constant 0 : index
    %c0_7 = arith.constant 0 : index
    %14 = vector.load %arg5[%c0_6, %c0_7] : memref<4x100xf32, #tpu.memory_space<vmem>>, vector<1x100xf32>
    %15 = vector.broadcast %14 : vector<1x100xf32> to vector<8x100xf32>
    %16 = arith.mulf %13, %15 : vector<8x100xf32>
    %c0_8 = arith.constant 0 : index
    %c0_9 = arith.constant 0 : index
    %17 = vector.load %arg3[%c0_8, %c0_9] : memref<8x3xf32, #tpu.memory_space<vmem>>, vector<8x1xf32>
    %c1_10 = arith.constant 1 : index
    %c0_11 = arith.constant 0 : index
    %18 = vector.load %arg5[%c1_10, %c0_11] : memref<4x100xf32, #tpu.memory_space<vmem>>, vector<1x100xf32>
    %19 = vector.broadcast %17 : vector<8x1xf32> to vector<8x100xf32>
    %20 = vector.broadcast %18 : vector<1x100xf32> to vector<8x100xf32>
    %21 = arith.mulf %19, %20 : vector<8x100xf32>
    %22 = arith.addf %16, %21 : vector<8x100xf32>
    %c0_12 = arith.constant 0 : index
    %c1_13 = arith.constant 1 : index
    %23 = vector.load %arg3[%c0_12, %c1_13] : memref<8x3xf32, #tpu.memory_space<vmem>>, vector<8x1xf32>
    %c2 = arith.constant 2 : index
    %c0_14 = arith.constant 0 : index
    %24 = vector.load %arg5[%c2, %c0_14] : memref<4x100xf32, #tpu.memory_space<vmem>>, vector<1x100xf32>
    %25 = vector.broadcast %23 : vector<8x1xf32> to vector<8x100xf32>
    %26 = vector.broadcast %24 : vector<1x100xf32> to vector<8x100xf32>
    %27 = arith.mulf %25, %26 : vector<8x100xf32>
    %28 = arith.addf %22, %27 : vector<8x100xf32>
    %c0_15 = arith.constant 0 : index
    %c2_16 = arith.constant 2 : index
    %29 = vector.load %arg3[%c0_15, %c2_16] : memref<8x3xf32, #tpu.memory_space<vmem>>, vector<8x1xf32>
    %c3 = arith.constant 3 : index
    %c0_17 = arith.constant 0 : index
    %30 = vector.load %arg5[%c3, %c0_17] : memref<4x100xf32, #tpu.memory_space<vmem>>, vector<1x100xf32>
    %31 = vector.broadcast %29 : vector<8x1xf32> to vector<8x100xf32>
    %32 = vector.broadcast %30 : vector<1x100xf32> to vector<8x100xf32>
    %33 = arith.mulf %31, %32 : vector<8x100xf32>
    %34 = arith.addf %28, %33 : vector<8x100xf32>
    %c0_18 = arith.constant 0 : index
    %c0_19 = arith.constant 0 : index
    %35 = vector.load %arg6[%c0_18, %c0_19] : memref<8x100xf32, #tpu.memory_space<vmem>>, vector<8x100xf32>
    tpu.vector_store %arg6[%c0_18, %c0_19], %34 {strides = array<i32>} : memref<8x100xf32, #tpu.memory_space<vmem>>, vector<8x100xf32>,
    return
  }
  func.func @transform_0(%arg0: i32, %arg1: i32) -> (i32, i32) {
    %c0_i32 = arith.constant 0 : i32
    %c0_i32_0 = arith.constant 0 : i32
    return %arg0, %c0_i32 : i32, i32
  }
  func.func @transform_1(%arg0: i32, %arg1: i32) -> (i32, i32) {
    %c0_i32 = arith.constant 0 : i32
    %c0_i32_0 = arith.constant 0 : i32
    return %arg0, %c0_i32 : i32, i32
  }
  func.func @transform_2(%arg0: i32, %arg1: i32) -> (i32, i32) {
    %c0_i32 = arith.constant 0 : i32
    %c0_i32_0 = arith.constant 0 : i32
    return %c0_i32, %arg1 : i32, i32
  }
  func.func @transform_3(%arg0: i32, %arg1: i32) -> (i32, i32) {
    %c0_i32 = arith.constant 0 : i32
    %c0_i32_0 = arith.constant 0 : i32
    return %c0_i32, %arg1 : i32, i32
  }
  func.func @transform_4(%arg0: i32, %arg1: i32) -> (i32, i32) {
    %c0_i32 = arith.constant 0 : i32
    return %arg0, %arg1 : i32, i32
  }
}

</mosaic_0001>

<bundles_post_ra>
// kernel: tpu_custom_call.1
= control target key start
LH: loop header
LB: loop body
LE: loop exit
PB: predicated region body
PF: predicated region fallthrough
CT: control target
= control target key end

     0   :  { %v149_v2 = vmov 0   ;;  %s214_s0 = inlined_call_operand.vmem [shape: f32[8,2], index: 0, kind: input, shape index: {}]   ;;  %s215_s1 = inlined_call_operand.vmem [shape: f32[8,3], index: 1, kind: input, shape index: {}]   ;;  %s216_s2 = inlined_call_operand.vmem [shape: f32[2,100], index: 2, kind: input, shape index: {}]   ;;  %s217_s3 = inlined_call_operand.vmem [shape: f32[4,100], index: 3, kind: input, shape index: {}]   ;;  %s218_s4 = inlined_call_operand.hbm [shape: f32[8,100], index: 4, kind: output, shape index: {}]  }
   0x1   :  { %v18_v0 = vld [vmem:[%s214_s0] sm:$0xff]  ;;  %117 = vset.pattern.permute.xlu0 %v149_v2  ;;  %119 = vset.pattern.permute.xlu1 %v149_v2 }
   0x2   :  { %v56_v1 = vld [vmem:[%s215_s1] sm:$0xff] }
   0x3   :  { %9 = vsyncpa [#allocation3], 0  ;;  %22 = vperm.xlu0 %117, %v18_v0   ;;  %60 = vperm.xlu1 %119, %v56_v1   ;;  %v150_v3 = vmov 1   ;;  %v151_v4 = vmov 2   ;;  %v107_v6 = vld [vmem:[%s216_s2] ss:$0 sm:$0xff] }
   0x4   :  { %v108_v7 = vld [vmem:[%s216_s2 + $0x1] ss:$0 sm:$0xff]  ;;  %v109_v18 = vld [vmem:[%s217_s3] ss:$0 sm:$0xff]  ;;  %v111_v23 = vld [vmem:[%s217_s3 + $0x2] ss:$0 sm:$0xff] }
   0x5   :  { %v110_v19 = vld [vmem:[%s217_s3 + $0x1] ss:$0 sm:$0xff]  ;;  %v112_v24 = vld [vmem:[%s217_s3 + $0x3] ss:$0 sm:$0xff]  ;;  %s152_s28 = smov [#allocation2]   ;;  %vm91_vm2 = vcmask 818176  }
   0x6   :  { %s99_s29 = sshll.u32 %s152_s28, 4  ;;  %s100_s29 = int_to_ptr.vmem [resolvable:$true] %s99_s29 }
   0x7   :  { %118 = vset.pattern.permute.xlu0 %v150_v3  ;;  %120 = vset.pattern.permute.xlu1 %v150_v3  ;;  %s125_s30 = scalar_lea.vmem %s100_s29, 128  ;;  %p130_p1 = scmp.lt.s32.totalorder %s100_s29, %s100_s29 }
   0x8   :  { %33 = vperm.xlu0 %118, %v18_v0   ;;  %71 = vperm.xlu1 %120, %v56_v1   ;;  %p126_p0 = scmp.ne.s32.totalorder %s100_s29, %s125_s30  ;;  %p131_p2 = scmp.lt.s32.totalorder %s125_s30, %s125_s30 }
   0xa   :  { %p132_p3 = por %p131_p2, %p130_p1 }
   0xc   :  { %121 = vset.pattern.permute.xlu1 %v151_v4  ;;  %122 = vset.pattern.permute.xlu0 %v151_v4  ;;  %p133_p4 = pnand %p132_p3, %p126_p0 }
   0xd   :  { %82 = vperm.xlu1 %121, %v56_v1  }
  0x82   :  { %v23_v5 = vpop.permute.xlu0 %22  ;;  %v61_v14 = vpop.permute.xlu1 %60 }
  0x83   :  { %v29_v8 = vsub.f32 %v23_v5, %v107_v6  ;;  %v67_v27 = vmul.f32 %v110_v19, %v61_v14 }
  0x85   :  { %v30_v11 = vmul.f32 %v29_v8, %v29_v8 }
  0x87   :  { %v34_v9 = vpop.permute.xlu0 %33  ;;  %v72_v15 = vpop.permute.xlu1 %71 }
  0x88   :  { %v40_v10 = vsub.f32 %v34_v9, %v108_v7  ;;  %v78_v29 = vmul.f32 %v111_v23, %v72_v15 }
  0x8a   :  { %v41_v12 = vmul.f32 %v40_v10, %v40_v10 }
  0x8c   :  { %v42_v13 = vadd.f32 %v41_v12, %v30_v11  ;;  %v83_v25 = vpop.permute.xlu1 %82 }
  0x8d   :  { %v89_v30 = vmul.f32 %v112_v24, %v83_v25 }
  0x8e   :  { %123 = vrsqrt.f32 %v42_v13  ;;  %vm45_vm0 = vcmp.eq.f32.partialorder %v42_v13, inf  ;;  %v48_v20 = vand.u32 2147483648, %v42_v13  ;;  %vm47_vm1 = vcmp.eq.f32.partialorder %v42_v13, 0.0 }
  0x98   :  { %v124_v16 = vpop.eup %123 }
  0x99   :  { %v44_v17 = vmul.f32 %v124_v16, %v42_v13 }
  0x9b   :  { %v46_v21 = vsel %vm45_vm0, %v42_v13, %v44_v17 }
  0x9c   :  { %v49_v22 = vsel %vm47_vm1, %v48_v20, %v46_v21 }
  0x9d   :  { %v55_v26 = vmul.f32 %v109_v18, %v49_v22 }
  0x9f   :  { %v68_v28 = vadd.f32 %v67_v27, %v55_v26 }
  0xa1   :  { %v79_v31 = vadd.f32 %v78_v29, %v68_v28 }
  0xa3   :  { %v90_v32 = vadd.f32 %v89_v30, %v79_v31 }
  0xa5   :  { %92 = vst.msk [vmem:[#allocation2] sm:$0xff] %vm91_vm2, %v90_v32 }
  0xa6   :  { %136 = shalt.err (!%p133_p4)
}
  0xa7   :  { %s137_s6 = scalar_lea.hbm %s218_s4, 128 }
  0xa8   :  { %p138_p5 = scmp.ne.s32.totalorder %s218_s4, %s137_s6  ;;  %p141_p6 = scmp.lt.u32.totalorder %s137_s6, %s218_s4 }
  0xaa   :  { %p143_p7 = pnand %p141_p6, %p138_p5 }
  0xac   :  { %146 = shalt.err (!%p143_p7)
}
  0xad   :  { %102 = dma.vmem_to_hbm [thread:$0]  %s100_s29, 128, %s218_s4, [#allocation3]  }
  0xae   :  { %147 = dma.done.wait [#allocation3], 128  }
  0xaf   :  { %148 = vsyncadd [#allocation3], 4294967168 }
  0xb0   :  { %106 = vsyncpa [#allocation3], 1 }

</bundles_post_ra>
